<compile_context>
chip_gen: v7x
topology: tpu7x:2x2x1
jax: 0.10.0
libtpu: 0.0.40
codegen_flags: <defaults>
</compile_context>

<pallas_src>
from collections import namedtuple

import jax
import jax.numpy as jnp
from jax.experimental import pallas as pl
from jax.experimental.pallas import tpu as pltpu


def _round_up(x, m):
    return (x + m - 1) // m * m


# ----------------------------- Pallas kernels --------------------------------
def _lm_head_kernel_single(h_ref, w_ref, o_ref):
    # Full-D reduction in one MXU pass: no accumulator, no pl.when phases.
    # h_ref: (tm, D) bf16   w_ref: (D, tn) bf16   o_ref: (tm, tn)
    o_ref[...] = jnp.dot(
        h_ref[...], w_ref[...], preferred_element_type=jnp.float32
    ).astype(o_ref.dtype)


def _lm_head_kernel_kout(h_ref, w_ref, o_ref):
    # K-tiled, f32 output: accumulate directly into the resident output tile
    # (saves the VMEM scratch and the final acc->out copy).
    @pl.when(pl.program_id(2) == 0)
    def _init():
        o_ref[...] = jnp.zeros_like(o_ref)

    o_ref[...] += jnp.dot(
        h_ref[...], w_ref[...], preferred_element_type=jnp.float32
    )


def _lm_head_kernel_kacc(h_ref, w_ref, o_ref, acc_ref):
    # K-tiled with an f32 scratch accumulator (used when out_dtype != f32).
    @pl.when(pl.program_id(2) == 0)
    def _init():
        acc_ref[...] = jnp.zeros_like(acc_ref)

    acc_ref[...] += jnp.dot(
        h_ref[...], w_ref[...], preferred_element_type=jnp.float32
    )

    @pl.when(pl.program_id(2) == pl.num_programs(2) - 1)
    def _store():
        o_ref[...] = acc_ref[...].astype(o_ref.dtype)


# --------------------------- tile configuration ------------------------------
TileConfig = namedtuple(
    "TileConfig", ["tm", "tn", "tk", "D_pad", "V_pad", "vmem_budget"]
)


def _choose_lm_head_tiles(D, V):
    """Per-generation tile targets and VMEM budget. D, V are logical dims."""
    kind = ""
    try:
        kind = jax.devices()[0].device_kind.lower()
    except Exception:  # pragma: no cover - defensive; keep conservative tiles
        pass

    if "v7" in kind:
        # 64 MiB physical VMEM, ~3.2 TB/s HBM: tm=512 already saturates MXU.
        tm_target, tk_cap, budget = 512, 2048, 40 * 1024 * 1024
    elif "v6" in kind:
        # 128 MiB VMEM, ~650 bf16 flops/byte balance: grow tm to 1024.
        tm_target, tk_cap, budget = 1024, 4096, 96 * 1024 * 1024
    elif "v5" in kind:
        # Low HBM BW but only 1 vst slot: moderate tm, maximize tk (= D).
        tm_target, tk_cap, budget = 512, 4096, 80 * 1024 * 1024
    else:
        tm_target, tk_cap, budget = 512, 2048, 40 * 1024 * 1024

    tn = min(1024, _round_up(V, 128))
    V_pad = _round_up(V, tn)

    # Prefer a single full-D reduction block (no K grid axis / accumulator).
    if D <= tk_cap:
        tk, D_pad = D, D
    else:
        tk = tk_cap                       # multiple of 128 -> legal block dim
        D_pad = _round_up(D, tk)

    return TileConfig(tm_target, tn, tk, D_pad, V_pad, budget)


def prepare_lm_head_table(embed_weight, tiles):
    """One-time cast + pad + transpose of the tied table -> (D_pad, V_pad) bf16."""
    V, D = embed_weight.shape
    w = embed_weight.astype(jnp.bfloat16)
    if (V, D) != (tiles.V_pad, tiles.D_pad):
        w = jnp.pad(w, ((0, tiles.V_pad - V), (0, tiles.D_pad - D)))
    return jnp.transpose(w)  # (D_pad, V_pad)


# ------------------------------ LM head call ----------------------------------
def lm_head_pallas(hidden, w_t, tiles, v_out, *, out_dtype=jnp.float32):
    """hidden: (M, D) f32; w_t: cached (D_pad, V_pad) bf16 transposed table.
    Returns logits (M, v_out) = hidden @ E^T with bf16 MXU operands and f32
    accumulation."""
    M, D = hidden.shape
    D_pad, V_pad = w_t.shape
    tn, tk = tiles.tn, tiles.tk
    out_bytes = jnp.dtype(out_dtype).itemsize
    k_steps = D_pad // tk

    # bf16 packs 16 rows per vreg; round the M tile to a multiple of 16.
    tm = min(tiles.tm, _round_up(M, 16))

    # Shrink tm until the double-buffered footprint fits the VMEM budget.
    def _footprint(tm_):
        f = 2 * tm_ * tk * 2            # hidden, bf16, double-buffered
        f += 2 * tk * tn * 2            # weights, bf16, double-buffered
        f += 2 * tm_ * tn * out_bytes   # output tile, double-buffered
        if k_steps > 1 and jnp.dtype(out_dtype) != jnp.dtype(jnp.float32):
            f += tm_ * tn * 4           # scratch accumulator
        return f

    while tm > 16 and _footprint(tm) > tiles.vmem_budget:
        tm = max(16, (tm // 2) // 16 * 16)

    M_pad = _round_up(M, tm)

    # Only the small (M, D) activation is cast/padded per call.
    h = hidden.astype(jnp.bfloat16)
    if (M_pad, D_pad) != (M, D):
        h = jnp.pad(h, ((0, M_pad - M), (0, D_pad - D)))

    cost = pl.CostEstimate(
        flops=2 * M_pad * V_pad * D_pad,
        transcendentals=0,
        bytes_accessed=(
            V_pad * D_pad * 2 * (M_pad // tm)     # weight re-streams
            + M_pad * D_pad * 2 * (V_pad // tn)   # hidden re-streams
            + M_pad * V_pad * out_bytes           # logits writeback
        ),
    )
    out_shape = jax.ShapeDtypeStruct((M_pad, V_pad), out_dtype)

    if k_steps == 1:
        grid = (M_pad // tm, V_pad // tn)
        out = pl.pallas_call(
            _lm_head_kernel_single,
            out_shape=out_shape,
            grid_spec=pltpu.PrefetchScalarGridSpec(
                num_scalar_prefetch=0,
                grid=grid,
                in_specs=[
                    pl.BlockSpec((tm, D_pad), lambda i, j: (i, 0)),  # hidden
                    pl.BlockSpec((D_pad, tn), lambda i, j: (0, j)),  # weights
                ],
                out_specs=pl.BlockSpec((tm, tn), lambda i, j: (i, j)),
            ),
            compiler_params=pltpu.CompilerParams(
                dimension_semantics=("parallel", "parallel"),
                vmem_limit_bytes=tiles.vmem_budget,
            ),
            cost_estimate=cost,
        )(h, w_t)
    else:
        grid = (M_pad // tm, V_pad // tn, k_steps)
        if jnp.dtype(out_dtype) == jnp.dtype(jnp.float32):
            kernel, scratch = _lm_head_kernel_kout, []
        else:
            kernel, scratch = (
                _lm_head_kernel_kacc,
                [pltpu.VMEM((tm, tn), jnp.float32)],
            )
        out = pl.pallas_call(
            kernel,
            out_shape=out_shape,
            grid_spec=pltpu.PrefetchScalarGridSpec(
                num_scalar_prefetch=0,
                grid=grid,
                in_specs=[
                    pl.BlockSpec((tm, tk), lambda i, j, k: (i, k)),  # hidden
                    pl.BlockSpec((tk, tn), lambda i, j, k: (k, j)),  # weights
                ],
                out_specs=pl.BlockSpec((tm, tn), lambda i, j, k: (i, j)),
                scratch_shapes=scratch,
            ),
            compiler_params=pltpu.CompilerParams(
                dimension_semantics=("parallel", "parallel", "arbitrary"),
                vmem_limit_bytes=tiles.vmem_budget,
            ),
            cost_estimate=cost,
        )(h, w_t)

    if (M_pad, V_pad) != (M, v_out):
        out = out[:M, :v_out]
    return out


# --------------------------- Model (JAX glue) --------------------------------
class SimpleLMHeadModelNoFFN:
    def __init__(self, d_model, vocab_size, max_position_embeddings,
                 n_layer=1, pad_vocab_size_multiple=1, key=None):
        if vocab_size % pad_vocab_size_multiple != 0:
            vocab_size += pad_vocab_size_multiple - vocab_size % pad_vocab_size_multiple
        self.d_model = d_model
        self.vocab_size = vocab_size
        self.max_position_embeddings = max_position_embeddings
        self.n_layer = n_layer

        k_word, k_pos = jax.random.split(key, 2)
        # nn.Embedding default init ~ N(0, 1); deterministic synthetic params.
        self.word_embeddings = jax.random.normal(
            k_word, (vocab_size, d_model), dtype=jnp.float32)
        if max_position_embeddings > 0:
            self.position_embeddings = jax.random.normal(
                k_pos, (max_position_embeddings, d_model), dtype=jnp.float32)
        else:
            self.position_embeddings = None

        # lm_head.weight is tied to word_embeddings (tie_weights()).
        # Pre-pack the tied table once: bf16, padded, transposed to (D, V).
        self._tiles = _choose_lm_head_tiles(d_model, self.vocab_size)
        self._lm_head_w_t = jax.block_until_ready(
            prepare_lm_head_table(self.word_embeddings, self._tiles))

    def forward(self, input_ids, position_ids=None):
        B, L = input_ids.shape
        D, V = self.d_model, self.vocab_size

        # Embedding gathers (glue; table lookup, not the hot path).
        word_emb = jnp.take(self.word_embeddings, input_ids, axis=0)  # (B, L, D)
        if self.max_position_embeddings > 0:
            if position_ids is None:
                position_ids = jnp.broadcast_to(
                    jnp.arange(L, dtype=jnp.int32), (B, L))
            pos_emb = jnp.take(self.position_embeddings, position_ids, axis=0)
            hidden = word_emb + pos_emb        # hoisted f32 add (tiny M*D op)
        else:
            hidden = word_emb

        # embed_dropout: identity in eval / no effect on lm_logits since the
        # mixer consumes pre-dropout `embeddings` in the reference forward.
        # TODO(synk): registry-configured mixer treated as identity.

        # Hot path in Pallas: hidden @ word_embeddings^T (tied lm_head).
        logits = lm_head_pallas(
            hidden.reshape(B * L, D),
            self._lm_head_w_t,
            self._tiles,
            V,
        ).reshape(B, L, V)
        return logits


# --------------------------------- main ---------------------------------------
if __name__ == "__main__":
    key = jax.random.PRNGKey(0)
    k_params, k_ids = jax.random.split(key)

    batch, seqlen = 2, 8
    d_model = 32
    vocab_size = 250                 # padded to 256 below
    pad_vocab_size_multiple = 8
    max_position_embeddings = 16

    model = SimpleLMHeadModelNoFFN(
        d_model=d_model,
        vocab_size=vocab_size,
        max_position_embeddings=max_position_embeddings,
        n_layer=1,
        pad_vocab_size_multiple=pad_vocab_size_multiple,
        key=k_params,
    )

    input_ids = jax.random.randint(
        k_ids, (batch, seqlen), 0, model.vocab_size, dtype=jnp.int32)

    logits = model.forward(input_ids)
    logits = jax.block_until_ready(logits)

    # Reference check in plain JAX (same bf16-operand / f32-accumulate math).
    we = jnp.take(model.word_embeddings, input_ids, axis=0)
    pe = jnp.take(model.position_embeddings,
                  jnp.broadcast_to(jnp.arange(seqlen, dtype=jnp.int32),
                                   (batch, seqlen)), axis=0)
    h_ref = (we + pe).astype(jnp.bfloat16).reshape(batch * seqlen, d_model)
    ref = jax.lax.dot_general(
        h_ref, model.word_embeddings.astype(jnp.bfloat16),
        dimension_numbers=(((1,), (1,)), ((), ())),
        preferred_element_type=jnp.float32,
    ).reshape(batch, seqlen, model.vocab_size)

    assert logits.shape == (batch, seqlen, model.vocab_size)
    assert jnp.allclose(logits, ref, atol=1e-2, rtol=1e-2)

    print("KERNEL_OK")
</pallas_src>

<mosaic_0001>
module attributes {stable_mosaic.version = 11 : i64} {
  func.func @_lm_head_kernel_single(%arg0: i32, %arg1: i32, %arg2: memref<16x32xbf16, #tpu.memory_space<vmem>>, %arg3: memref<32x256xbf16, #tpu.memory_space<vmem>>, %arg4: memref<16x256xf32, #tpu.memory_space<vmem>>) attributes {dimension_semantics = [#tpu.dimension_semantics<parallel>, #tpu.dimension_semantics<parallel>], iteration_bounds = array<i64: 1, 1>, scalar_prefetch = 0 : i64, scratch_operands = 0 : i64, tpu.core_type = #tpu.core_type<tc>, window_params = [{transform_indices = @transform_0, window_bounds = array<i64: 16, 32>}, {transform_indices = @transform_1, window_bounds = array<i64: 32, 256>}, {transform_indices = @transform_2, window_bounds = array<i64: 16, 256>}]} {
    %c0 = arith.constant 0 : index
    %c0_0 = arith.constant 0 : index
    %0 = vector.load %arg2[%c0, %c0_0] : memref<16x32xbf16, #tpu.memory_space<vmem>>, vector<16x32xbf16>
    %c0_1 = arith.constant 0 : index
    %c0_2 = arith.constant 0 : index
    %1 = vector.load %arg3[%c0_1, %c0_2] : memref<32x256xbf16, #tpu.memory_space<vmem>>, vector<32x256xbf16>
    %cst = arith.constant dense<0.000000e+00> : vector<16x256xf32>
    %2 = tpu.matmul %0, %1, %cst {dimension_numbers = #tpu.dot_dimension_numbers<[1], [0], [0], [1], [0, 0, 1, 1], [], []>} : vector<16x32xbf16>, vector<32x256xbf16>, vector<16x256xf32> -> vector<16x256xf32>
    %c0_3 = arith.constant 0 : index
    %c0_4 = arith.constant 0 : index
    %3 = vector.load %arg4[%c0_3, %c0_4] : memref<16x256xf32, #tpu.memory_space<vmem>>, vector<16x256xf32>
    tpu.vector_store %arg4[%c0_3, %c0_4], %2 {strides = array<i32>} : memref<16x256xf32, #tpu.memory_space<vmem>>, vector<16x256xf32>,
    return
  }
  func.func @transform_0(%arg0: i32, %arg1: i32) -> (i32, i32) {
    %c0_i32 = arith.constant 0 : i32
    %c0_i32_0 = arith.constant 0 : i32
    return %arg0, %c0_i32 : i32, i32
  }
  func.func @transform_1(%arg0: i32, %arg1: i32) -> (i32, i32) {
    %c0_i32 = arith.constant 0 : i32
    %c0_i32_0 = arith.constant 0 : i32
    return %c0_i32, %arg1 : i32, i32
  }
  func.func @transform_2(%arg0: i32, %arg1: i32) -> (i32, i32) {
    %c0_i32 = arith.constant 0 : i32
    return %arg0, %arg1 : i32, i32
  }
}

</mosaic_0001>

<bundles_post_ra>
// kernel: tpu_custom_call.1
= control target key start
LH: loop header
LB: loop body
LE: loop exit
PB: predicated region body
PF: predicated region fallthrough
CT: control target
= control target key end

     0   :  { %7 = vsyncpa [#allocation3], 0  ;;  %s297_s0 = inlined_call_operand.hbm [shape: bf16[16,32], index: 0, kind: input, shape index: {}]   ;;  %s298_s1 = inlined_call_operand.hbm [shape: bf16[32,256], index: 1, kind: input, shape index: {}]   ;;  %s299_s2 = inlined_call_operand.hbm [shape: f32[16,256], index: 2, kind: output, shape index: {}]  }
   0x1   :  { %8 = vsyncpa [#allocation6], 0 }
   0x2   :  { %9 = vsyncpa [#allocation4], 0  ;;  %s236_s9 = smov [#allocation2]   ;;  %s164_s13 = scalar_lea.hbm %s297_s0, 128 }
   0x3   :  { %s15_s10 = sshll.u32 %s236_s9, 4  ;;  %p165_p0 = scmp.ne.s32.totalorder %s297_s0, %s164_s13  ;;  %s16_s10 = int_to_ptr.vmem [resolvable:$true] %s15_s10 }
   0x4   :  { %p168_p1 = scmp.lt.u32.totalorder %s164_s13, %s297_s0 }
   0x6   :  { %p170_p2 = pnand %p168_p1, %p165_p0 }
   0x8   :  { %173 = shalt.err (!%p170_p2)
}
   0x9   :  { %s174_s18 = scalar_lea.vmem %s16_s10, 128  ;;  %p179_p4 = scmp.lt.s32.totalorder %s16_s10, %s16_s10 }
   0xa   :  { %p175_p3 = scmp.ne.s32.totalorder %s16_s10, %s174_s18  ;;  %p180_p5 = scmp.lt.s32.totalorder %s174_s18, %s174_s18 }
   0xc   :  { %p181_p6 = por %p180_p5, %p179_p4 }
   0xe   :  { %p182_p7 = pnand %p181_p6, %p175_p3 }
  0x10   :  { %185 = shalt.err (!%p182_p7)
}
  0x11   :  { %s237_s19 = smov 64   ;;  %s238_s20 = smov 4  }
  0x12   :  { %21 = dma.hbm_to_vmem [thread:$0]  %s297_s0, 128, %s16_s10, [#allocation3], %s237_s19, %s237_s19, %s238_s20  }
  0x13   :  { %s239_s23 = smov [#allocation5]   ;;  %s186_s27 = scalar_lea.hbm %s298_s1, 512 }
  0x14   :  { %s27_s24 = sshll.u32 %s239_s23, 4  ;;  %p187_p8 = scmp.ne.s32.totalorder %s298_s1, %s186_s27  ;;  %s28_s24 = int_to_ptr.vmem [resolvable:$true] %s27_s24 }
  0x15   :  { %p190_p9 = scmp.lt.u32.totalorder %s186_s27, %s298_s1 }
  0x17   :  { %p192_p10 = pnand %p190_p9, %p187_p8 }
  0x19   :  { %195 = shalt.err (!%p192_p10)
}
  0x1a   :  { %s196_s4 = scalar_lea.vmem %s28_s24, 512  ;;  %p201_p12 = scmp.lt.s32.totalorder %s28_s24, %s28_s24 }
  0x1b   :  { %p197_p11 = scmp.ne.s32.totalorder %s28_s24, %s196_s4  ;;  %p202_p13 = scmp.lt.s32.totalorder %s196_s4, %s196_s4 }
  0x1d   :  { %p203_p0 = por %p202_p13, %p201_p12 }
  0x1f   :  { %p204_p1 = pnand %p203_p0, %p197_p11 }
  0x21   :  { %207 = shalt.err (!%p204_p1)
}
  0x22   :  { %s240_s0 = smov 128   ;;  %s241_s5 = smov 8  }
  0x23   :  { %33 = dma.hbm_to_vmem [thread:$0]  %s298_s1, 512, %s28_s24, [#allocation6], %s240_s0, %s240_s0, %s241_s5  }
  0x24   :  { %230 = dma.done.wait [#allocation3], 128  }
  0x25   :  { %231 = vsyncadd [#allocation3], 4294967168 }
  0x26   :  { %232 = dma.done.wait [#allocation6], 512  }
  0x27   :  { %233 = vsyncadd [#allocation6], 4294966784  ;;  %v242_v0 = vmov 0   ;;  %v157_v1 = vld [vmem:[#allocation5 + $0x4] ss:$8 sps:$4 sm:$0xff]   ;;  %v163_v5 = vld [vmem:[#allocation2] sm:$0xff]  }
  0x28   :  { %108 = vmatprep.mubr.bf16.mxu0 %v242_v0  ;;  %v159_v2 = vld [vmem:[#allocation5] ss:$8 sps:$4 sm:$0xff]   ;;  %76 = vmatprep.subr.bf16.mxu0 %v157_v1  ;;  %v160_v3 = vld [vmem:[#allocation5 + $0x14] ss:$8 sps:$4 sm:$0xff]   ;;  %v162_v4 = vld [vmem:[#allocation5 + $0x10] ss:$8 sps:$4 sm:$0xff]  }
  0x29   :  { %77 = vmatpush1.bf16.msra.mxu0 %v159_v2  ;;  %vm72_vm0 = vcmask 261120   ;;  %s243_s8 = smov [#allocation7]  }
  0x2a   :  { %78 = vmatprep.subr.bf16.mxu0 %v160_v3  ;;  %s128_s9 = sshll.u32 %s243_s8, 4  ;;  %s129_s9 = int_to_ptr.vmem [resolvable:$true] %s128_s9 }
  0x2b   :  { %s208_s1 = scalar_lea.vmem %s129_s9, 512  ;;  %p213_p3 = scmp.lt.s32.totalorder %s129_s9, %s129_s9 }
  0x2c   :  { %p209_p2 = scmp.ne.s32.totalorder %s129_s9, %s208_s1  ;;  %p214_p4 = scmp.lt.s32.totalorder %s208_s1, %s208_s1 }
  0x2d   :  { %79 = vmatpush1.bf16.msra.mxu0 %v162_v4 }
  0x2e   :  { %p215_p5 = por %p214_p4, %p213_p3 }
  0x30   :  { %146 = vmatmul.mubr.msk.bf16.vlgmr.msra.gmra.mrb[0].mxu0 %vm72_vm0, %v163_v5  ;;  %p216_p6 = pnand %p215_p5, %p209_p2 }
 0x103   :  { %v110_v6 = vpop.f32.mrb[0].mxu0 }
 0x104   :  { %119 = vst [vmem:[#allocation7] sm:$0xff] %v110_v6  ;;  %v112_v7 = vpop.f32.mrb[1].mxu0 }
 0x105   :  { %120 = vst [vmem:[#allocation7 + $0x8] sm:$0xff] %v112_v7  ;;  %v114_v8 = vpop.f32.mrb[2].mxu0 }
 0x106   :  { %121 = vst [vmem:[#allocation7 + $0x10] sm:$0xff] %v114_v8  ;;  %v116_v9 = vpop.f32.mrb[3].mxu0 }
 0x107   :  { %122 = vst [vmem:[#allocation7 + $0x18] sm:$0xff] %v116_v9 }
 0x108   :  { %219 = shalt.err (!%p216_p6)
}
 0x109   :  { %s220_s12 = scalar_lea.hbm %s299_s2, 512 }
 0x10a   :  { %p221_p7 = scmp.ne.s32.totalorder %s299_s2, %s220_s12  ;;  %p224_p8 = scmp.lt.u32.totalorder %s220_s12, %s299_s2 }
 0x10c   :  { %p226_p9 = pnand %p224_p8, %p221_p7 }
 0x10e   :  { %229 = shalt.err (!%p226_p9)
}
 0x10f   :  { %s244_s17 = smov 256   ;;  %s245_s18 = smov 16  }
 0x110   :  { %134 = dma.vmem_to_hbm [thread:$0]  %s129_s9, 512, %s299_s2, [#allocation4], %s244_s17, %s244_s17, %s245_s18  }
 0x111   :  { %234 = dma.done.wait [#allocation4], 512  }
 0x112   :  { %235 = vsyncadd [#allocation4], 4294966784 }
 0x113   :  { %138 = vsyncpa [#allocation3], 1 }
 0x114   :  { %139 = vsyncpa [#allocation6], 1 }
 0x115   :  { %140 = vsyncpa [#allocation4], 1 }

</bundles_post_ra>
